<compile_context>
chip_gen: v7x
topology: tpu7x:2x2x1
jax: 0.10.0
libtpu: 0.0.40
codegen_flags: <defaults>
</compile_context>

<pallas_src>
import functools

import jax
import jax.numpy as jnp
from jax import lax
from jax.experimental import pallas as pl
from jax.experimental.pallas import tpu as pltpu


def _round_up(x, m):
    return ((x + m - 1) // m) * m


def _proxy_anchor_kernel(mrg_ref, x_ref, p_ref, lab_ref, pos_ref, neg_ref, *, alpha):
    """One row-tile of the Proxy-Anchor forward.

    mrg_ref : (1, 1) f32 in SMEM       -- learnable margin
    x_ref   : (TM, D_pad) f32          -- raw embeddings for this row tile
    p_ref   : (C_pad, D_pad) f32       -- L2-normalized proxies (resident)
    lab_ref : (TM, 1) int32            -- labels for this tile (-1 = padded row)
    pos_ref : (1, 1, C_pad) f32 out    -- per-tile positive class sums
    neg_ref : (1, 1, C_pad) f32 out    -- per-tile negative class sums
    """
    mrg = mrg_ref[0, 0]

    x = x_ref[...]                                            # (TM, D_pad)
    # torch l2_norm: x / sqrt(sum(x^2) + 1e-12) -> x * rsqrt(...) (EUP slot)
    ssq = jnp.sum(x * x, axis=-1, keepdims=True)
    xn = x * lax.rsqrt(ssq + 1e-12)

    # cos = normalize(X) @ normalize(P).T  (contract feature dim on the MXU)
    cos = lax.dot_general(xn, p_ref[...], (((1,), (1,)), ((), ())),
                          preferred_element_type=jnp.float32)  # (TM, C_pad)
    c_pad = cos.shape[1]

    lab = lab_ref[...]                                         # (TM, 1) int32
    cls = lax.broadcasted_iota(jnp.int32, (1, c_pad), 1)       # single small iota
    onehot = lab == cls                                        # (TM, C_pad) bool
    valid = lab >= 0                                           # (TM, 1) bool (mask padded rows)

    pos_exp = jnp.exp(-alpha * (cos - mrg))
    neg_exp = jnp.exp(alpha * (cos + mrg))

    pos_c = jnp.where(onehot, pos_exp, 0.0)
    neg_c = jnp.where(jnp.logical_and(valid, jnp.logical_not(onehot)), neg_exp, 0.0)

    pos_ref[...] = jnp.sum(pos_c, axis=0, keepdims=True)[None]  # (1, 1, C_pad)
    neg_ref[...] = jnp.sum(neg_c, axis=0, keepdims=True)[None]


def proxy_anchor_adaptive_margin_loss(X, T, proxies, mrg, *, nb_classes,
                                      alpha=32.0, scale_margin=1.0, tm=256):
    """X: [N, D] f32 embeddings, T: [N] int labels, proxies: [C, D] f32, mrg: scalar."""
    X = X.astype(jnp.float32)
    proxies = proxies.astype(jnp.float32)
    T = T.astype(jnp.int32)
    N, D = X.shape
    C = int(nb_classes)

    # Lane-dense padding (feature and class dims to multiples of 128).
    D_pad = _round_up(D, 128)
    C_pad = _round_up(C, 128)
    # Row tile: 256 fits v7x (64 MiB VMEM) comfortably; v6e could go 512+,
    # v5e should stay at <= 256 (16 MiB default scoped VMEM).
    TM = min(int(tm), _round_up(N, 8))
    N_pad = _round_up(N, TM)
    num_tiles = N_pad // TM

    # Zero-pad feature dim (does not change norms or dot products); padded
    # batch rows get label -1 so they contribute to neither class sum.
    Xp = jnp.zeros((N_pad, D_pad), jnp.float32).at[:N, :D].set(X)
    Tp = jnp.full((N_pad, 1), -1, jnp.int32).at[:N, 0].set(T)

    # Normalize proxies ONCE here (resident operand across all row tiles).
    Pn = proxies / jnp.sqrt(jnp.sum(proxies * proxies, axis=1, keepdims=True) + 1e-12)
    Pp = jnp.zeros((C_pad, D_pad), jnp.float32).at[:C, :D].set(Pn)

    mrg_arr = jnp.asarray(mrg, jnp.float32).reshape(1, 1)

    kernel = functools.partial(_proxy_anchor_kernel, alpha=float(alpha))

    pos_part, neg_part = pl.pallas_call(
        kernel,
        out_shape=(
            jax.ShapeDtypeStruct((num_tiles, 1, C_pad), jnp.float32),
            jax.ShapeDtypeStruct((num_tiles, 1, C_pad), jnp.float32),
        ),
        grid=(num_tiles,),
        in_specs=[
            pl.BlockSpec(memory_space=pltpu.MemorySpace.SMEM),       # mrg scalar
            pl.BlockSpec((TM, D_pad), lambda i: (i, 0)),             # X row tile
            pl.BlockSpec((C_pad, D_pad), lambda i: (0, 0)),          # proxies (resident)
            pl.BlockSpec((TM, 1), lambda i: (i, 0)),                 # labels tile
        ],
        out_specs=(
            pl.BlockSpec((1, 1, C_pad), lambda i: (i, 0, 0)),
            pl.BlockSpec((1, 1, C_pad), lambda i: (i, 0, 0)),
        ),
        compiler_params=pltpu.CompilerParams(
            dimension_semantics=("parallel",),     # row tiles split across TCs (v7x)
            vmem_limit_bytes=48 * 1024 * 1024,
        ),
    )(mrg_arr, Xp, Pp, Tp)

    # Global (whole-batch) reductions on tiny (num_tiles, C) partials in plain JAX.
    P_sim_sum = jnp.sum(pos_part[:, 0, :C], axis=0)       # (C,)
    N_sim_sum = jnp.sum(neg_part[:, 0, :C], axis=0)       # (C,)

    # num_valid_proxies: classes with >= 1 positive in the batch (from labels,
    # not from an in-kernel full-matrix any()).
    num_valid = jnp.sum(
        jnp.any(T[None, :] == jnp.arange(C, dtype=jnp.int32)[:, None], axis=1)
        .astype(jnp.float32))

    pos_term = jnp.sum(jnp.log1p(P_sim_sum)) / num_valid
    neg_term = jnp.sum(jnp.log1p(N_sim_sum)) / C
    margin_term = scale_margin / jnp.mean(jnp.asarray(mrg, jnp.float32))
    return pos_term + neg_term + margin_term


def _reference(X, T, proxies, mrg, nb_classes, alpha=32.0, scale_margin=1.0):
    """Pure-JAX replica of the PyTorch forward (for the sanity check)."""
    X = X.astype(jnp.float32)
    P = proxies.astype(jnp.float32)

    def l2n(v):
        return v / jnp.sqrt(jnp.sum(v * v, axis=1, keepdims=True) + 1e-12)

    cos = l2n(X) @ l2n(P).T                                   # (N, C)
    onehot = (T[:, None] == jnp.arange(nb_classes)[None, :]).astype(jnp.float32)
    pos_exp = jnp.exp(-alpha * (cos - mrg))
    neg_exp = jnp.exp(alpha * (cos + mrg))
    num_valid = jnp.sum((jnp.sum(onehot, axis=0) != 0).astype(jnp.float32))
    P_sim_sum = jnp.sum(jnp.where(onehot == 1, pos_exp, 0.0), axis=0)
    N_sim_sum = jnp.sum(jnp.where(onehot == 0, neg_exp, 0.0), axis=0)
    pos_term = jnp.sum(jnp.log(1.0 + P_sim_sum)) / num_valid
    neg_term = jnp.sum(jnp.log(1.0 + N_sim_sum)) / nb_classes
    return pos_term + neg_term + scale_margin / jnp.mean(jnp.asarray(mrg, jnp.float32))


if __name__ == "__main__":
    key = jax.random.PRNGKey(0)
    kx, kp = jax.random.split(key)

    # Small shapes consistent with the module: batch=8, sz_embed=32, nb_classes=6.
    N, D, C = 8, 32, 6
    X = jax.random.normal(kx, (N, D), dtype=jnp.float32)
    # kaiming_normal(mode='fan_out') ~ N(0, 2/nb_classes); exact init irrelevant here.
    proxies = jax.random.normal(kp, (C, D), dtype=jnp.float32) * jnp.sqrt(2.0 / C)
    T = jnp.array([0, 0, 1, 2, 2, 3, 4, 5], dtype=jnp.int32)
    mrg = 0.1

    loss = proxy_anchor_adaptive_margin_loss(X, T, proxies, mrg, nb_classes=C)
    jax.block_until_ready(loss)

    ref = _reference(X, T, proxies, mrg, C)
    assert jnp.isfinite(loss), ("non-finite loss", loss)
    assert jnp.allclose(loss, ref, atol=2e-3, rtol=2e-3), (loss, ref)
    print("KERNEL_OK")
</pallas_src>

<mosaic_0001>
module attributes {stable_mosaic.version = 11 : i64} {
  func.func @_proxy_anchor_kernel(%arg0: i32, %arg1: memref<1x1xf32, #tpu.memory_space<smem>>, %arg2: memref<8x128xf32, #tpu.memory_space<vmem>>, %arg3: memref<128x128xf32, #tpu.memory_space<vmem>>, %arg4: memref<8x1xi32, #tpu.memory_space<vmem>>, %arg5: memref<1x1x128xf32, #tpu.memory_space<vmem>>, %arg6: memref<1x1x128xf32, #tpu.memory_space<vmem>>) attributes {dimension_semantics = [#tpu.dimension_semantics<parallel>], iteration_bounds = array<i64: 1>, scalar_prefetch = 0 : i64, scratch_operands = 0 : i64, tpu.core_type = #tpu.core_type<tc>, window_params = [{transform_indices = @transform_0, window_bounds = array<i64: 1, 1>}, {transform_indices = @transform_1, window_bounds = array<i64: 8, 128>}, {pipeline_mode = #tpu.pipeline_mode<synchronous>, transform_indices = @transform_2, window_bounds = array<i64: 128, 128>}, {transform_indices = @transform_3, window_bounds = array<i64: 8, 1>}, {transform_indices = @transform_4, window_bounds = array<i64: 1, 1, 128>}, {transform_indices = @transform_5, window_bounds = array<i64: 1, 1, 128>}]} {
    %c0 = arith.constant 0 : index
    %c0_0 = arith.constant 0 : index
    %0 = memref.load %arg1[%c0, %c0_0] : memref<1x1xf32, #tpu.memory_space<smem>>
    %c0_1 = arith.constant 0 : index
    %c0_2 = arith.constant 0 : index
    %1 = vector.load %arg2[%c0_1, %c0_2] : memref<8x128xf32, #tpu.memory_space<vmem>>, vector<8x128xf32>
    %2 = arith.mulf %1, %1 : vector<8x128xf32>
    %cst = arith.constant dense<0.000000e+00> : vector<8xf32>
    %3 = vector.multi_reduction <add>, %2, %cst [1] : vector<8x128xf32> to vector<8xf32>
    %4 = vector.shape_cast %3 : vector<8xf32> to vector<8x1xf32>
    %cst_3 = arith.constant 9.99999996E-13 : f32
    %5 = vector.broadcast %cst_3 : f32 to vector<8x1xf32>
    %6 = arith.addf %4, %5 : vector<8x1xf32>
    %7 = math.rsqrt %6 : vector<8x1xf32>
    %8 = vector.broadcast %7 : vector<8x1xf32> to vector<8x128xf32>
    %9 = arith.mulf %1, %8 : vector<8x128xf32>
    %c0_4 = arith.constant 0 : index
    %c0_5 = arith.constant 0 : index
    %10 = vector.load %arg3[%c0_4, %c0_5] : memref<128x128xf32, #tpu.memory_space<vmem>>, vector<128x128xf32>
    %cst_6 = arith.constant dense<0.000000e+00> : vector<8x128xf32>
    %11 = tpu.matmul %9, %10, %cst_6 {dimension_numbers = #tpu.dot_dimension_numbers<[1], [1], [0], [0], [0, 0, 1, 0], [], []>} : vector<8x128xf32>, vector<128x128xf32>, vector<8x128xf32> -> vector<8x128xf32>
    %c0_7 = arith.constant 0 : index
    %c0_8 = arith.constant 0 : index
    %12 = vector.load %arg4[%c0_7, %c0_8] : memref<8x1xi32, #tpu.memory_space<vmem>>, vector<8x1xi32>
    %13 = tpu.iota {dimensions = array<i32: 1>} : vector<1x128xi32>
    %14 = vector.broadcast %12 : vector<8x1xi32> to vector<8x128xi32>
    %15 = vector.broadcast %13 : vector<1x128xi32> to vector<8x128xi32>
    %16 = arith.cmpi eq, %14, %15 : vector<8x128xi32>
    %c0_i32 = arith.constant 0 : i32
    %17 = vector.broadcast %c0_i32 : i32 to vector<8x1xi32>
    %18 = arith.cmpi sge, %12, %17 : vector<8x1xi32>
    %19 = vector.broadcast %0 : f32 to vector<8x128xf32>
    %20 = arith.subf %11, %19 : vector<8x128xf32>
    %cst_9 = arith.constant -3.200000e+01 : f32
    %21 = vector.broadcast %cst_9 : f32 to vector<8x128xf32>
    %22 = arith.mulf %21, %20 : vector<8x128xf32>
    %23 = math.exp %22 : vector<8x128xf32>
    %24 = vector.broadcast %0 : f32 to vector<8x128xf32>
    %25 = arith.addf %11, %24 : vector<8x128xf32>
    %cst_10 = arith.constant 3.200000e+01 : f32
    %26 = vector.broadcast %cst_10 : f32 to vector<8x128xf32>
    %27 = arith.mulf %26, %25 : vector<8x128xf32>
    %28 = math.exp %27 : vector<8x128xf32>
    %cst_11 = arith.constant 0.000000e+00 : f32
    %29 = vector.broadcast %cst_11 : f32 to vector<8x128xf32>
    %30 = arith.select %16, %23, %29 : vector<8x128xi1>, vector<8x128xf32>
    %cst_12 = arith.constant dense<true> : vector<8x128xi1>
    %31 = arith.xori %16, %cst_12 : vector<8x128xi1>
    %32 = vector.broadcast %18 : vector<8x1xi1> to vector<8x128xi1>
    %33 = arith.andi %32, %31 : vector<8x128xi1>
    %cst_13 = arith.constant 0.000000e+00 : f32
    %34 = vector.broadcast %cst_13 : f32 to vector<8x128xf32>
    %35 = arith.select %33, %28, %34 : vector<8x128xi1>, vector<8x128xf32>
    %cst_14 = arith.constant dense<0.000000e+00> : vector<128xf32>
    %36 = vector.multi_reduction <add>, %30, %cst_14 [0] : vector<8x128xf32> to vector<128xf32>
    %37 = vector.shape_cast %36 : vector<128xf32> to vector<1x128xf32>
    %38 = vector.shape_cast %37 : vector<1x128xf32> to vector<1x1x128xf32>
    %c0_15 = arith.constant 0 : index
    %c0_16 = arith.constant 0 : index
    %c0_17 = arith.constant 0 : index
    %39 = vector.load %arg5[%c0_15, %c0_16, %c0_17] : memref<1x1x128xf32, #tpu.memory_space<vmem>>, vector<1x1x128xf32>
    tpu.vector_store %arg5[%c0_15, %c0_16, %c0_17], %38 {strides = array<i32>} : memref<1x1x128xf32, #tpu.memory_space<vmem>>, vector<1x1x128xf32>,
    %cst_18 = arith.constant dense<0.000000e+00> : vector<128xf32>
    %40 = vector.multi_reduction <add>, %35, %cst_18 [0] : vector<8x128xf32> to vector<128xf32>
    %41 = vector.shape_cast %40 : vector<128xf32> to vector<1x128xf32>
    %42 = vector.shape_cast %41 : vector<1x128xf32> to vector<1x1x128xf32>
    %c0_19 = arith.constant 0 : index
    %c0_20 = arith.constant 0 : index
    %c0_21 = arith.constant 0 : index
    %43 = vector.load %arg6[%c0_19, %c0_20, %c0_21] : memref<1x1x128xf32, #tpu.memory_space<vmem>>, vector<1x1x128xf32>
    tpu.vector_store %arg6[%c0_19, %c0_20, %c0_21], %42 {strides = array<i32>} : memref<1x1x128xf32, #tpu.memory_space<vmem>>, vector<1x1x128xf32>,
    return
  }
  func.func @transform_0(%arg0: i32) -> (i32, i32) {
    %c0_i32 = arith.constant 0 : i32
    %c0_i32_0 = arith.constant 0 : i32
    %c0_i32_1 = arith.constant 0 : i32
    return %c0_i32, %c0_i32_0 : i32, i32
  }
  func.func @transform_1(%arg0: i32) -> (i32, i32) {
    %c0_i32 = arith.constant 0 : i32
    %c0_i32_0 = arith.constant 0 : i32
    return %arg0, %c0_i32 : i32, i32
  }
  func.func @transform_2(%arg0: i32) -> (i32, i32) {
    %c0_i32 = arith.constant 0 : i32
    %c0_i32_0 = arith.constant 0 : i32
    %c0_i32_1 = arith.constant 0 : i32
    return %c0_i32, %c0_i32_0 : i32, i32
  }
  func.func @transform_3(%arg0: i32) -> (i32, i32) {
    %c0_i32 = arith.constant 0 : i32
    %c0_i32_0 = arith.constant 0 : i32
    return %arg0, %c0_i32 : i32, i32
  }
  func.func @transform_4(%arg0: i32) -> (i32, i32, i32) {
    %c0_i32 = arith.constant 0 : i32
    %c0_i32_0 = arith.constant 0 : i32
    %c0_i32_1 = arith.constant 0 : i32
    return %arg0, %c0_i32, %c0_i32_0 : i32, i32, i32
  }
  func.func @transform_5(%arg0: i32) -> (i32, i32, i32) {
    %c0_i32 = arith.constant 0 : i32
    %c0_i32_0 = arith.constant 0 : i32
    %c0_i32_1 = arith.constant 0 : i32
    return %arg0, %c0_i32, %c0_i32_0 : i32, i32, i32
  }
}

</mosaic_0001>

<bundles_post_ra>
// kernel: tpu_custom_call.1
= control target key start
LH: loop header
LB: loop body
LE: loop exit
PB: predicated region body
PF: predicated region fallthrough
CT: control target
= control target key end

     0   :  { %12 = vsyncpa [#allocation4], 0  ;;  %s458_s0 = inlined_call_operand.<no memory space> [shape: f32[1,1], index: 0, kind: input, shape index: {}]   ;;  %s459_s1 = inlined_call_operand.vmem [shape: f32[8,128], index: 1, kind: input, shape index: {}]   ;;  %s460_s2 = inlined_call_operand.hbm [shape: f32[128,128], index: 2, kind: input, shape index: {}]   ;;  %s461_s3 = inlined_call_operand.vmem [shape: s32[8,1], index: 3, kind: input, shape index: {}]   ;;  %s462_s4 = inlined_call_operand.hbm [shape: f32[1,1,128], index: 4, kind: output, shape index: {0}]   ;;  %s463_s5 = inlined_call_operand.hbm [shape: f32[1,1,128], index: 5, kind: output, shape index: {1}]  }
   0x1   :  { %13 = vsyncpa [#allocation5], 0 }
   0x2   :  { %14 = vsyncpa [#allocation8], 0  ;;  %s365_s18 = smov [#allocation3]   ;;  %s293_s22 = scalar_lea.hbm %s460_s2, 2048 }
   0x3   :  { %s24_s19 = sshll.u32 %s365_s18, 4  ;;  %p294_p0 = scmp.ne.s32.totalorder %s460_s2, %s293_s22  ;;  %s25_s19 = int_to_ptr.vmem [resolvable:$true] %s24_s19 }
   0x4   :  { %p297_p1 = scmp.lt.u32.totalorder %s293_s22, %s460_s2 }
   0x6   :  { %p299_p2 = pnand %p297_p1, %p294_p0 }
   0x8   :  { %302 = shalt.err (!%p299_p2)
}
   0x9   :  { %s303_s27 = scalar_lea.vmem %s25_s19, 2048  ;;  %p308_p4 = scmp.lt.s32.totalorder %s25_s19, %s25_s19 }
   0xa   :  { %p304_p3 = scmp.ne.s32.totalorder %s25_s19, %s303_s27  ;;  %p309_p5 = scmp.lt.s32.totalorder %s303_s27, %s303_s27 }
   0xc   :  { %p310_p6 = por %p309_p5, %p308_p4 }
   0xe   :  { %p311_p7 = pnand %p310_p6, %p304_p3 }
  0x10   :  { %314 = shalt.err (!%p311_p7)
}
  0x11   :  { %s366_s28 = smov 128   ;;  %s367_s29 = smov 8  }
  0x12   :  { %30 = dma.hbm_to_vmem [thread:$0]  %s460_s2, 2048, %s25_s19, [#allocation4], %s366_s28, %s366_s28, %s367_s29  }
  0x13   :  { %359 = dma.done.wait [#allocation4], 2048  }
  0x14   :  { %360 = vsyncadd [#allocation4], 4294965248  ;;  %v368_v0 = vmov 0.0|0.0   ;;  %v37_v1 = vld [vmem:[%s459_s1] sm:$0xff]  ;;  %v45_v3 = vld [vmem:[#allocation3 + $0x8] sm:$0xff]  ;;  %vm369_vm0 = vmmov 0   ;;  %v138_v35 = vstv %s458_s0  ;;  %v131_v40 = vlaneseq }
  0x15   :  { %251 = vmatprep.subr.bf16.mxu0 %v368_v0  ;;  %v44_v2 = vld [vmem:[#allocation3] sm:$0xff]  ;;  %v38_v4 = vmul.f32 %v37_v1, %v37_v1  ;;  %v46_v6 = vld [vmem:[#allocation3 + $0x10] sm:$0xff]  ;;  %v47_v7 = vld [vmem:[#allocation3 + $0x18] sm:$0xff]  ;;  %v370_v14 = vmov 0.0   ;;  %v371_v20 = vmov 0   ;;  %vm372_vm3 = vmmov 1  }
  0x16   :  { %v252_v5 = vpack.c.bf16 %v45_v3, %v44_v2  ;;  %v255_v8 = vpack.c.bf16 %v47_v7, %v46_v6  ;;  %v48_v9 = vld [vmem:[#allocation3 + $0x20] sm:$0xff]  ;;  %v49_v10 = vld [vmem:[#allocation3 + $0x28] sm:$0xff]  ;;  %v50_v12 = vld [vmem:[#allocation3 + $0x30] sm:$0xff]  ;;  %248 = vmatprep.mubr.msk.f32.mxu0 %vm369_vm0, %v370_v14  ;;  %285 = vset.pattern.permute.xlu0 %v371_v20  ;;  %v132_v45 = vand.u32 127, %v131_v40  ;;  %s373_s0 = smov [#allocation6]   ;;  %s374_s11 = smov [#allocation7]  }
  0x17   :  { %39 = vadd.xlane.f32.xlu0 %v38_v4  ;;  %v258_v11 = vpack.c.bf16 %v49_v10, %v48_v9  ;;  %v51_v13 = vld [vmem:[#allocation3 + $0x38] sm:$0xff]  ;;  %v52_v16 = vld [vmem:[#allocation3 + $0x40] sm:$0xff]  ;;  %v53_v17 = vld [vmem:[#allocation3 + $0x48] sm:$0xff]  ;;  %286 = vset.pattern.permute.xlu1 %v371_v20  ;;  %s176_s10 = sshll.u32 %s373_s0, 4  ;;  %s186_s12 = sshll.u32 %s374_s11, 4  ;;  %s177_s10 = int_to_ptr.vmem [resolvable:$true] %s176_s10  ;;  %s426_s12 = int_to_ptr.vmem [resolvable:$true] %s186_s12 }
  0x18   :  { %253 = vmatpush3.bf16.xpose.msra.mxu0 %v252_v5  ;;  %v261_v15 = vpack.c.bf16 %v51_v13, %v50_v12  ;;  %v264_v18 = vpack.c.bf16 %v53_v17, %v52_v16  ;;  %v130_v19 = vld [vmem:[%s461_s3] sm:$0xff]  ;;  %v54_v22 = vld [vmem:[#allocation3 + $0x50] sm:$0xff]  ;;  %v55_v23 = vld [vmem:[#allocation3 + $0x58] sm:$0xff]  ;;  %s315_s13 = scalar_lea.vmem %s177_s10, 16  ;;  %s319_s14 = scalar_lea.vmem %s177_s10, 32 }
  0x19   :  { %254 = vmatprep.subr.bf16.mxu0 %v368_v0  ;;  %vm137_vm1 = vcmp.ge.s32.totalorder %v130_v19, 0  ;;  %v267_v24 = vpack.c.bf16 %v55_v23, %v54_v22  ;;  %v56_v25 = vld [vmem:[#allocation3 + $0x60] sm:$0xff]  ;;  %v57_v26 = vld [vmem:[#allocation3 + $0x68] sm:$0xff]  ;;  %v58_v28 = vld [vmem:[#allocation3 + $0x70] sm:$0xff]  ;;  %p316_p8 = scmp.ne.s32.totalorder %s177_s10, %s315_s13  ;;  %p320_p9 = scmp.lt.s32.totalorder %s177_s10, %s177_s10 }
  0x1a   :  { %v149_v21 = vsel %vm137_vm1, 1, %v371_v20  ;;  %v270_v27 = vpack.c.bf16 %v57_v26, %v56_v25  ;;  %v59_v29 = vld [vmem:[#allocation3 + $0x78] sm:$0xff]  ;;  %p321_p10 = scmp.lt.s32.totalorder %s319_s14, %s315_s13 }
  0x1b   :  { %151 = vperm.xlu1 %286, %v149_v21   ;;  %v273_v30 = vpack.c.bf16 %v59_v29, %v58_v28 }
  0x1c   :  { %p322_p11 = por %p321_p10, %p320_p9 }
  0x1e   :  { %p323_p12 = pnand %p322_p11, %p316_p8 }
  0x20   :  { %256 = vmatpush3.bf16.xpose.msra.mxu0 %v255_v8 }
  0x21   :  { %257 = vmatprep.subr.bf16.mxu0 %v368_v0 }
  0x28   :  { %259 = vmatpush3.bf16.xpose.msra.mxu0 %v258_v11 }
  0x29   :  { %260 = vmatprep.subr.bf16.mxu0 %v368_v0 }
  0x2d   :  { %134 = vperm.xlu0 %285, %v130_v19  }
  0x30   :  { %262 = vmatpush3.bf16.xpose.msra.mxu0 %v261_v15 }
  0x31   :  { %263 = vmatprep.subr.bf16.mxu0 %v368_v0 }
  0x38   :  { %265 = vmatpush3.bf16.xpose.msra.mxu0 %v264_v18 }
  0x39   :  { %266 = vmatprep.subr.bf16.mxu0 %v368_v0 }
  0x40   :  { %268 = vmatpush3.bf16.xpose.msra.mxu0 %v267_v24 }
  0x41   :  { %269 = vmatprep.subr.bf16.mxu0 %v368_v0 }
  0x48   :  { %271 = vmatpush3.bf16.xpose.msra.mxu0 %v270_v27 }
  0x49   :  { %272 = vmatprep.subr.bf16.mxu0 %v368_v0 }
  0x50   :  { %274 = vmatpush3.bf16.xpose.msra.mxu0 %v273_v30 }
  0x9a   :  { %v152_v47 = vpop.permute.xlu1 %151 }
  0x9b   :  { %vm153_vm5 = vcmp.eq.s32.totalorder %v152_v47, 1 }
  0xa4   :  { %v40_v31 = vpop.xlane.xlu0 %39 }
  0xa5   :  { %v41_v32 = vadd.f32 1e-12, %v40_v31 }
  0xa7   :  { %287 = vrsqrt.f32 %v41_v32 }
  0xac   :  { %v135_v46 = vpop.permute.xlu0 %134 }
  0xad   :  { %vm136_vm2 = vcmp.eq.s32.totalorder %v135_v46, %v132_v45 }
  0xae   :  { %vm148_vm4 = vmxor %vm136_vm2, %vm372_vm3 }
  0xaf   :  { %vm154_vm6 = vmand %vm153_vm5, %vm148_vm4 }
  0xb1   :  { %v288_v33 = vpop.eup %287 }
  0xb2   :  { %v43_v34 = vmul.f32 %v288_v33, %v37_v1 }
  0xb4   :  { %249 = vmatmul.mubr.f32.vlgmr.msra.gmra.mrb[0].mxu0 %v43_v34 }
 0x187   :  { %v126_v36 = vpop.f32.mrb[0].mxu0 }
 0x188   :  { %v139_v37 = vsub.f32 %v126_v36, %v138_v35  ;;  %v143_v38 = vadd.f32 %v138_v35, %v126_v36  ;;  %v250_v39 = vpop.f32.mrb[1].mxu0 }
 0x18a   :  { %v140_v41 = vmul.f32 -32.0, %v139_v37  ;;  %v144_v42 = vmul.f32 32.0, %v143_v38 }
 0x18c   :  { %v141_v43 = vmul.f32 1.442695, %v140_v41  ;;  %v145_v44 = vmul.f32 1.442695, %v144_v42 }
 0x18e   :  { %289 = vpow2.f32 %v141_v43 }
 0x18f   :  { %291 = vpow2.f32 %v145_v44 }
 0x198   :  { %v290_v48 = vpop.eup %289 }
 0x199   :  { %v292_v49 = vpop.eup %291  ;;  %v147_v50 = vsel %vm136_vm2, %v290_v48, 0.0 }
 0x19a   :  { %v156_v51 = vrot.slane %v147_v50, 4  ;;  %v155_v52 = vsel %vm154_vm6, %v292_v49, 0.0 }
 0x19b   :  { %v163_v53 = vrot.slane %v155_v52, 4 }
 0x19c   :  { %v157_v54 = vadd.f32 %v156_v51, %v147_v50 }
 0x19d   :  { %v164_v55 = vadd.f32 %v163_v53, %v155_v52 }
 0x19e   :  { %v158_v56 = vrot.slane %v157_v54, 2 }
 0x19f   :  { %v165_v57 = vrot.slane %v164_v55, 2 }
 0x1a0   :  { %v159_v58 = vadd.f32 %v158_v56, %v157_v54 }
 0x1a1   :  { %v166_v59 = vadd.f32 %v165_v57, %v164_v55 }
 0x1a2   :  { %v160_v60 = vrot.slane %v159_v58, 1 }
 0x1a3   :  { %v167_v61 = vrot.slane %v166_v59, 1 }
 0x1a4   :  { %v161_v62 = vadd.f32 %v160_v60, %v159_v58 }
 0x1a5   :  { %v168_v63 = vadd.f32 %v167_v61, %v166_v59 }
 0x1a6   :  { %162 = vst [vmem:[#allocation6] sm:$0x1] %v161_v62 }
 0x1a7   :  { %326 = shalt.err (!%p323_p12)
}
 0x1a8   :  { %s327_s17 = scalar_lea.hbm %s462_s4, 16 }
 0x1a9   :  { %p328_p13 = scmp.ne.s32.totalorder %s462_s4, %s327_s17  ;;  %p331_p0 = scmp.lt.u32.totalorder %s327_s17, %s462_s4 }
 0x1ab   :  { %p333_p1 = pnand %p331_p0, %p328_p13 }
 0x1ad   :  { %336 = shalt.err (!%p333_p1)
}
 0x1ae   :  { %179 = dma.vmem_to_hbm [thread:$0]  %s177_s10, 16, %s462_s4, [#allocation5]   ;;  %169 = vst [vmem:[#allocation7] sm:$0x1] %v168_v63 }
 0x1af   :  { %s337_s24 = scalar_lea.vmem %s426_s12, 16  ;;  %s341_s25 = scalar_lea.vmem %s426_s12, 32 }
 0x1b0   :  { %p338_p2 = scmp.ne.s32.totalorder %s426_s12, %s337_s24  ;;  %p342_p3 = scmp.lt.s32.totalorder %s426_s12, %s426_s12 }
 0x1b1   :  { %p343_p4 = scmp.lt.s32.totalorder %s341_s25, %s337_s24 }
 0x1b3   :  { %p344_p5 = por %p343_p4, %p342_p3 }
 0x1b5   :  { %p345_p6 = pnand %p344_p5, %p338_p2 }
 0x1b7   :  { %348 = shalt.err (!%p345_p6)
}
 0x1b8   :  { %s349_s28 = scalar_lea.hbm %s463_s5, 16 }
 0x1b9   :  { %p350_p7 = scmp.ne.s32.totalorder %s463_s5, %s349_s28  ;;  %p353_p8 = scmp.lt.u32.totalorder %s349_s28, %s463_s5 }
 0x1bb   :  { %p355_p9 = pnand %p353_p8, %p350_p7 }
 0x1bd   :  { %358 = shalt.err (!%p355_p9)
}
 0x1be   :  { %189 = dma.vmem_to_hbm [thread:$0]  %s426_s12, 16, %s463_s5, [#allocation8]  }
 0x1bf   :  { %361 = dma.done.wait [#allocation5], 16  }
 0x1c0   :  { %362 = vsyncadd [#allocation5], 4294967280 }
 0x1c1   :  { %363 = dma.done.wait [#allocation8], 16  }
 0x1c2   :  { %364 = vsyncadd [#allocation8], 4294967280 }
 0x1c3   :  { %196 = vsyncpa [#allocation4], 1 }
 0x1c4   :  { %197 = vsyncpa [#allocation5], 1 }
 0x1c5   :  { %198 = vsyncpa [#allocation8], 1 }

</bundles_post_ra>
